<compile_context>
chip_gen: v7x
topology: tpu7x:2x2x1
jax: 0.10.0
libtpu: 0.0.40
codegen_flags: <defaults>
</compile_context>

<pallas_src>
import numpy as np
import jax
import jax.numpy as jnp
from jax import lax
from jax.experimental import pallas as pl
from jax.experimental.pallas import tpu as pltpu

# ---- model hyper-parameters (mirror CNN.__init__) ---------------------------
FEATURE_NUM = 4          # feature_num
WINDOW_SIZE = 32         # window_size
CONV_K = (3, 1)          # conv_kernel_sizes
POOL_K = (3, 3)          # maxpooling_kernel_sizes
C1 = FEATURE_NUM         # conv1 out channels  (conv_channels[1])
C2 = 40                  # conv2 out channels  (conv_channels[2])
FC1_OUT = 20
FC2_OUT = 2

# valid-conv / floor-maxpool lengths (matches cal_fc_features)
L1 = WINDOW_SIZE - CONV_K[0] + 1              # 30
L1P = (L1 - POOL_K[0]) // POOL_K[0] + 1       # 10
L2 = L1P - CONV_K[1] + 1                      # 10
L2P = (L2 - POOL_K[1]) // POOL_K[1] + 1       # 3
FC_IN = C2 * L2P                              # 120

XROWS = WINDOW_SIZE * FEATURE_NUM             # 128  (l-major, ci-minor)
H1ROWS = POOL_K[0] * L1P * C1                 # 120  (m-major, j, co)
P1ROWS = L1P * C1                             # 40   (j-major, c1)
H2ROWS = POOL_K[1] * L2P * C2                 # 360  (m2-major, j2, c2)
P2ROWS = L2P * C2                             # 120  (j2-major, c2)


# ---- Pallas kernel: full forward pass for one TB-wide batch slab -------------
def cnn_kernel(x_ref, w1_ref, b1_ref, w2_ref, b2_ref,
               wf1_ref, bf1_ref, wf2_ref, bf2_ref, o_ref):
    x = x_ref[...]                                            # (128, TB), batch on lanes

    # conv1 (+bias, ReLU) as one folded matmul; output rows ordered pool-offset-major.
    h1 = jnp.dot(w1_ref[...], x, preferred_element_type=jnp.float32)
    h1 = jnp.maximum(h1 + b1_ref[...], 0.0)                   # (120, TB)

    # maxpool1: max of three ALIGNED 40-row sublane blocks (rows = j*4 + c1).
    p1 = jnp.maximum(jnp.maximum(h1[0:P1ROWS], h1[P1ROWS:2 * P1ROWS]),
                     h1[2 * P1ROWS:3 * P1ROWS])               # (40, TB)

    # conv2 (1x1, +bias, ReLU) as one folded matmul (K=40, M=360, N=TB).
    h2 = jnp.dot(w2_ref[...], p1, preferred_element_type=jnp.float32)
    h2 = jnp.maximum(h2 + b2_ref[...], 0.0)                   # (360, TB)

    # maxpool2: max of three ALIGNED 120-row blocks (rows = j2*40 + c2).
    p2 = jnp.maximum(jnp.maximum(h2[0:P2ROWS], h2[P2ROWS:2 * P2ROWS]),
                     h2[2 * P2ROWS:3 * P2ROWS])               # (120, TB)

    # fc1: single (20,120) @ (120,TB) dot (flatten permutation folded into weight).
    h3 = jnp.dot(wf1_ref[...], p2, preferred_element_type=jnp.float32)
    h3 = jnp.maximum(h3 + bf1_ref[...], 0.0)                  # (20, TB)

    # fc2 + final ReLU (matches the reference module); lane-dense (2, TB) store.
    out = jnp.dot(wf2_ref[...], h3, preferred_element_type=jnp.float32)
    o_ref[...] = jnp.maximum(out + bf2_ref[...], 0.0).astype(o_ref.dtype)


# ---- wrapper-side parameter folding (tiny, done once per call) ---------------
def _fold_params(params):
    w1, b1 = params["w1"], params["b1"]            # (4,4,3), (4,)
    w2, b2 = params["w2"], params["b2"]            # (40,4,1), (40,)
    wf1, bf1 = params["wf1"], params["bf1"]        # (20,120), (20,)
    wf2, bf2 = params["wf2"], params["bf2"]        # (2,20),  (2,)

    # conv1 -> dense (120,128) Toeplitz; rows (m,j,co), cols (l,ci); l1 = 3j+m.
    s1 = np.zeros((POOL_K[0], L1P, CONV_K[0], WINDOW_SIZE), np.float32)
    for m in range(POOL_K[0]):
        for j in range(L1P):
            for k in range(CONV_K[0]):
                s1[m, j, k, 3 * j + m + k] = 1.0
    w1f = jnp.einsum("oik,mjkl->mjoli", w1, jnp.asarray(s1)).reshape(H1ROWS, XROWS)
    b1f = jnp.tile(b1, POOL_K[0] * L1P).reshape(H1ROWS, 1)

    # conv2 (1x1) -> dense (360,40); rows (m2,j2,c2), cols (j,c1); j = 3*j2+m2.
    s2 = np.zeros((POOL_K[1], L2P, L1P), np.float32)
    for m2 in range(POOL_K[1]):
        for j2 in range(L2P):
            s2[m2, j2, 3 * j2 + m2] = 1.0
    w2f = jnp.einsum("ca,mtj->mtcja", w2[:, :, 0], jnp.asarray(s2)).reshape(H2ROWS, P1ROWS)
    b2f = jnp.tile(b2, POOL_K[1] * L2P).reshape(H2ROWS, 1)

    # fc1: permute columns from torch flatten order (c2*3 + j2) to this kernel's
    # p2 row order (j2*40 + c2).
    wf1p = wf1.reshape(FC1_OUT, C2, L2P).transpose(0, 2, 1).reshape(FC1_OUT, FC_IN)
    bf1p = bf1.reshape(FC1_OUT, 1)
    wf2p = wf2                                     # (2, 20)
    bf2p = bf2.reshape(FC2_OUT, 1)
    return w1f, b1f, w2f, b2f, wf1p, bf1p, wf2p, bf2p


# ---- batch-tile choice (TB sits on the lane axis -> multiple of 128) ----------
def _choose_block_b(B):
    b128 = -(-B // 128) * 128
    if b128 <= 256:
        return b128                    # one fat step for small batches
    # >= 2 equal slabs (keeps both v7x TCs busy), capped at 1024 lanes per step
    half = -(-b128 // 2)
    half = -(-half // 128) * 128
    return min(1024, half)


# ---- wrapper -----------------------------------------------------------------
def cnn_forward(x_ncw, params, block_b=None):
    B, Cin, L = x_ncw.shape
    assert Cin == FEATURE_NUM and L == WINDOW_SIZE

    TB = block_b if block_b is not None else _choose_block_b(B)
    assert TB % 128 == 0
    grid_b = pl.cdiv(B, TB)
    B_pad = grid_b * TB

    # (B, Cin, L) -> (L*Cin, B): row = l*Cin + ci, batch on the lane axis.
    x2d = jnp.transpose(x_ncw, (2, 1, 0)).reshape(L * Cin, B)
    if B_pad != B:
        x2d = jnp.pad(x2d, ((0, 0), (0, B_pad - B)))

    w1f, b1f, w2f, b2f, wf1p, bf1p, wf2p, bf2p = _fold_params(params)

    def full(arr):  # whole (small) weight resident across the grid
        return pl.BlockSpec(arr.shape, lambda b: (0, 0))

    out = pl.pallas_call(
        cnn_kernel,
        out_shape=jax.ShapeDtypeStruct((FC2_OUT, B_pad), jnp.float32),
        grid=(grid_b,),
        in_specs=[
            pl.BlockSpec((XROWS, TB), lambda b: (0, b)),     # batch slab, lane-dense
            full(w1f), full(b1f), full(w2f), full(b2f),
            full(wf1p), full(bf1p), full(wf2p), full(bf2p),
        ],
        out_specs=pl.BlockSpec((FC2_OUT, TB), lambda b: (0, b)),  # lane-dense (2, TB)
        compiler_params=pltpu.CompilerParams(
            dimension_semantics=("parallel",)),
    )(x2d, w1f, b1f, w2f, b2f, wf1p, bf1p, wf2p, bf2p)

    return out[:, :B].T                                      # back to (B, 2)


# ---- deterministic parameter init (PyTorch shapes) ---------------------------
def init_params(key):
    ks = jax.random.split(key, 8)
    s = 0.1
    return {
        "w1": s * jax.random.normal(ks[0], (C1, FEATURE_NUM, CONV_K[0]), jnp.float32),
        "b1": s * jax.random.normal(ks[1], (C1,), jnp.float32),
        "w2": s * jax.random.normal(ks[2], (C2, C1, CONV_K[1]), jnp.float32),
        "b2": s * jax.random.normal(ks[3], (C2,), jnp.float32),
        "wf1": s * jax.random.normal(ks[4], (FC1_OUT, FC_IN), jnp.float32),
        "bf1": s * jax.random.normal(ks[5], (FC1_OUT,), jnp.float32),
        "wf2": s * jax.random.normal(ks[6], (FC2_OUT, FC1_OUT), jnp.float32),
        "bf2": s * jax.random.normal(ks[7], (FC2_OUT,), jnp.float32),
    }


# ---- plain-JAX reference (mirrors the PyTorch NCW forward) -------------------
def cnn_reference(x_ncw, params):
    hi = lax.Precision.HIGHEST

    def conv1d(x, w, b):
        y = lax.conv_general_dilated(x, w, (1,), "VALID",
                                     dimension_numbers=("NCH", "OIH", "NCH"),
                                     precision=hi)
        return y + b[None, :, None]

    def maxpool3(x):
        return lax.reduce_window(x, -jnp.inf, lax.max,
                                 (1, 1, 3), (1, 1, 3), "VALID")

    h = jax.nn.relu(conv1d(x_ncw, params["w1"], params["b1"]))
    h = maxpool3(h)
    h = jax.nn.relu(conv1d(h, params["w2"], params["b2"]))
    h = maxpool3(h)
    flat = h.reshape(h.shape[0], -1)
    h = jax.nn.relu(jnp.dot(flat, params["wf1"].T, precision=hi) + params["bf1"])
    return jax.nn.relu(jnp.dot(h, params["wf2"].T, precision=hi) + params["bf2"])


if __name__ == "__main__":
    key = jax.random.PRNGKey(0)
    kx, kp, kx2 = jax.random.split(key, 3)
    params = init_params(kp)

    # primary small test: B=2 (single grid step, padded lane axis)
    x = jax.random.normal(kx, (2, FEATURE_NUM, WINDOW_SIZE), jnp.float32)
    out = jax.block_until_ready(cnn_forward(x, params))
    ref = cnn_reference(x, params)
    assert out.shape == (2, FC2_OUT)
    if not bool(jnp.allclose(out, ref, atol=1e-3, rtol=1e-3)):
        raise AssertionError(
            f"Pallas CNN mismatch (B=2): max|diff|={float(jnp.max(jnp.abs(out - ref))):.3e}")

    # multi-grid-step + batch-padding path (B not a multiple of the batch tile)
    x2 = jax.random.normal(kx2, (300, FEATURE_NUM, WINDOW_SIZE), jnp.float32)
    out2 = jax.block_until_ready(cnn_forward(x2, params))
    ref2 = cnn_reference(x2, params)
    if not bool(jnp.allclose(out2, ref2, atol=1e-3, rtol=1e-3)):
        raise AssertionError(
            f"Pallas CNN mismatch (B=300): max|diff|={float(jnp.max(jnp.abs(out2 - ref2))):.3e}")

    print("KERNEL_OK")
</pallas_src>

<mosaic_0001>
module attributes {stable_mosaic.version = 11 : i64} {
  func.func @cnn_kernel(%arg0: i32, %arg1: memref<128x128xf32, #tpu.memory_space<vmem>>, %arg2: memref<120x128xf32, #tpu.memory_space<vmem>>, %arg3: memref<120x1xf32, #tpu.memory_space<vmem>>, %arg4: memref<360x40xf32, #tpu.memory_space<vmem>>, %arg5: memref<360x1xf32, #tpu.memory_space<vmem>>, %arg6: memref<20x120xf32, #tpu.memory_space<vmem>>, %arg7: memref<20x1xf32, #tpu.memory_space<vmem>>, %arg8: memref<2x20xf32, #tpu.memory_space<vmem>>, %arg9: memref<2x1xf32, #tpu.memory_space<vmem>>, %arg10: memref<2x128xf32, #tpu.memory_space<vmem>>) attributes {dimension_semantics = [#tpu.dimension_semantics<parallel>], iteration_bounds = array<i64: 1>, scalar_prefetch = 0 : i64, scratch_operands = 0 : i64, tpu.core_type = #tpu.core_type<tc>, window_params = [{transform_indices = @transform_0, window_bounds = array<i64: 128, 128>}, {pipeline_mode = #tpu.pipeline_mode<synchronous>, transform_indices = @transform_1, window_bounds = array<i64: 120, 128>}, {pipeline_mode = #tpu.pipeline_mode<synchronous>, transform_indices = @transform_2, window_bounds = array<i64: 120, 1>}, {pipeline_mode = #tpu.pipeline_mode<synchronous>, transform_indices = @transform_3, window_bounds = array<i64: 360, 40>}, {pipeline_mode = #tpu.pipeline_mode<synchronous>, transform_indices = @transform_4, window_bounds = array<i64: 360, 1>}, {pipeline_mode = #tpu.pipeline_mode<synchronous>, transform_indices = @transform_5, window_bounds = array<i64: 20, 120>}, {pipeline_mode = #tpu.pipeline_mode<synchronous>, transform_indices = @transform_6, window_bounds = array<i64: 20, 1>}, {pipeline_mode = #tpu.pipeline_mode<synchronous>, transform_indices = @transform_7, window_bounds = array<i64: 2, 20>}, {pipeline_mode = #tpu.pipeline_mode<synchronous>, transform_indices = @transform_8, window_bounds = array<i64: 2, 1>}, {transform_indices = @transform_9, window_bounds = array<i64: 2, 128>}]} {
    %c0 = arith.constant 0 : index
    %c0_0 = arith.constant 0 : index
    %0 = vector.load %arg1[%c0, %c0_0] : memref<128x128xf32, #tpu.memory_space<vmem>>, vector<128x128xf32>
    %c0_1 = arith.constant 0 : index
    %c0_2 = arith.constant 0 : index
    %1 = vector.load %arg2[%c0_1, %c0_2] : memref<120x128xf32, #tpu.memory_space<vmem>>, vector<120x128xf32>
    %cst = arith.constant dense<0.000000e+00> : vector<120x128xf32>
    %2 = tpu.matmul %1, %0, %cst {dimension_numbers = #tpu.dot_dimension_numbers<[1], [0], [0], [1], [0, 0, 1, 1], [], []>} : vector<120x128xf32>, vector<128x128xf32>, vector<120x128xf32> -> vector<120x128xf32>
    %c0_3 = arith.constant 0 : index
    %c0_4 = arith.constant 0 : index
    %3 = vector.load %arg3[%c0_3, %c0_4] : memref<120x1xf32, #tpu.memory_space<vmem>>, vector<120x1xf32>
    %4 = vector.broadcast %3 : vector<120x1xf32> to vector<120x128xf32>
    %5 = arith.addf %2, %4 : vector<120x128xf32>
    %cst_5 = arith.constant 0.000000e+00 : f32
    %6 = vector.broadcast %cst_5 : f32 to vector<120x128xf32>
    %7 = arith.maximumf %5, %6 : vector<120x128xf32>
    %8 = vector.extract_strided_slice %7 {offsets = [0, 0], sizes = [40, 128], strides = [1, 1]} : vector<120x128xf32> to vector<40x128xf32>
    %9 = vector.extract_strided_slice %7 {offsets = [40, 0], sizes = [40, 128], strides = [1, 1]} : vector<120x128xf32> to vector<40x128xf32>
    %10 = arith.maximumf %8, %9 : vector<40x128xf32>
    %11 = vector.extract_strided_slice %7 {offsets = [80, 0], sizes = [40, 128], strides = [1, 1]} : vector<120x128xf32> to vector<40x128xf32>
    %12 = arith.maximumf %10, %11 : vector<40x128xf32>
    %c0_6 = arith.constant 0 : index
    %c0_7 = arith.constant 0 : index
    %13 = vector.load %arg4[%c0_6, %c0_7] : memref<360x40xf32, #tpu.memory_space<vmem>>, vector<360x40xf32>
    %cst_8 = arith.constant dense<0.000000e+00> : vector<360x128xf32>
    %14 = tpu.matmul %13, %12, %cst_8 {dimension_numbers = #tpu.dot_dimension_numbers<[1], [0], [0], [1], [0, 0, 1, 1], [], []>} : vector<360x40xf32>, vector<40x128xf32>, vector<360x128xf32> -> vector<360x128xf32>
    %c0_9 = arith.constant 0 : index
    %c0_10 = arith.constant 0 : index
    %15 = vector.load %arg5[%c0_9, %c0_10] : memref<360x1xf32, #tpu.memory_space<vmem>>, vector<360x1xf32>
    %16 = vector.broadcast %15 : vector<360x1xf32> to vector<360x128xf32>
    %17 = arith.addf %14, %16 : vector<360x128xf32>
    %cst_11 = arith.constant 0.000000e+00 : f32
    %18 = vector.broadcast %cst_11 : f32 to vector<360x128xf32>
    %19 = arith.maximumf %17, %18 : vector<360x128xf32>
    %20 = vector.extract_strided_slice %19 {offsets = [0, 0], sizes = [120, 128], strides = [1, 1]} : vector<360x128xf32> to vector<120x128xf32>
    %21 = vector.extract_strided_slice %19 {offsets = [120, 0], sizes = [120, 128], strides = [1, 1]} : vector<360x128xf32> to vector<120x128xf32>
    %22 = arith.maximumf %20, %21 : vector<120x128xf32>
    %23 = vector.extract_strided_slice %19 {offsets = [240, 0], sizes = [120, 128], strides = [1, 1]} : vector<360x128xf32> to vector<120x128xf32>
    %24 = arith.maximumf %22, %23 : vector<120x128xf32>
    %c0_12 = arith.constant 0 : index
    %c0_13 = arith.constant 0 : index
    %25 = vector.load %arg6[%c0_12, %c0_13] : memref<20x120xf32, #tpu.memory_space<vmem>>, vector<20x120xf32>
    %cst_14 = arith.constant dense<0.000000e+00> : vector<20x128xf32>
    %26 = tpu.matmul %25, %24, %cst_14 {dimension_numbers = #tpu.dot_dimension_numbers<[1], [0], [0], [1], [0, 0, 1, 1], [], []>} : vector<20x120xf32>, vector<120x128xf32>, vector<20x128xf32> -> vector<20x128xf32>
    %c0_15 = arith.constant 0 : index
    %c0_16 = arith.constant 0 : index
    %27 = vector.load %arg7[%c0_15, %c0_16] : memref<20x1xf32, #tpu.memory_space<vmem>>, vector<20x1xf32>
    %28 = vector.broadcast %27 : vector<20x1xf32> to vector<20x128xf32>
    %29 = arith.addf %26, %28 : vector<20x128xf32>
    %cst_17 = arith.constant 0.000000e+00 : f32
    %30 = vector.broadcast %cst_17 : f32 to vector<20x128xf32>
    %31 = arith.maximumf %29, %30 : vector<20x128xf32>
    %c0_18 = arith.constant 0 : index
    %c0_19 = arith.constant 0 : index
    %32 = vector.load %arg8[%c0_18, %c0_19] : memref<2x20xf32, #tpu.memory_space<vmem>>, vector<2x20xf32>
    %cst_20 = arith.constant dense<0.000000e+00> : vector<2x128xf32>
    %33 = tpu.matmul %32, %31, %cst_20 {dimension_numbers = #tpu.dot_dimension_numbers<[1], [0], [0], [1], [0, 0, 1, 1], [], []>} : vector<2x20xf32>, vector<20x128xf32>, vector<2x128xf32> -> vector<2x128xf32>
    %c0_21 = arith.constant 0 : index
    %c0_22 = arith.constant 0 : index
    %34 = vector.load %arg9[%c0_21, %c0_22] : memref<2x1xf32, #tpu.memory_space<vmem>>, vector<2x1xf32>
    %35 = vector.broadcast %34 : vector<2x1xf32> to vector<2x128xf32>
    %36 = arith.addf %33, %35 : vector<2x128xf32>
    %cst_23 = arith.constant 0.000000e+00 : f32
    %37 = vector.broadcast %cst_23 : f32 to vector<2x128xf32>
    %38 = arith.maximumf %36, %37 : vector<2x128xf32>
    %c0_24 = arith.constant 0 : index
    %c0_25 = arith.constant 0 : index
    %39 = vector.load %arg10[%c0_24, %c0_25] : memref<2x128xf32, #tpu.memory_space<vmem>>, vector<2x128xf32>
    tpu.vector_store %arg10[%c0_24, %c0_25], %38 {strides = array<i32>} : memref<2x128xf32, #tpu.memory_space<vmem>>, vector<2x128xf32>,
    return
  }
  func.func @transform_0(%arg0: i32) -> (i32, i32) {
    %c0_i32 = arith.constant 0 : i32
    %c0_i32_0 = arith.constant 0 : i32
    return %c0_i32, %arg0 : i32, i32
  }
  func.func @transform_1(%arg0: i32) -> (i32, i32) {
    %c0_i32 = arith.constant 0 : i32
    %c0_i32_0 = arith.constant 0 : i32
    %c0_i32_1 = arith.constant 0 : i32
    return %c0_i32, %c0_i32_0 : i32, i32
  }
  func.func @transform_2(%arg0: i32) -> (i32, i32) {
    %c0_i32 = arith.constant 0 : i32
    %c0_i32_0 = arith.constant 0 : i32
    %c0_i32_1 = arith.constant 0 : i32
    return %c0_i32, %c0_i32_0 : i32, i32
  }
  func.func @transform_3(%arg0: i32) -> (i32, i32) {
    %c0_i32 = arith.constant 0 : i32
    %c0_i32_0 = arith.constant 0 : i32
    %c0_i32_1 = arith.constant 0 : i32
    return %c0_i32, %c0_i32_0 : i32, i32
  }
  func.func @transform_4(%arg0: i32) -> (i32, i32) {
    %c0_i32 = arith.constant 0 : i32
    %c0_i32_0 = arith.constant 0 : i32
    %c0_i32_1 = arith.constant 0 : i32
    return %c0_i32, %c0_i32_0 : i32, i32
  }
  func.func @transform_5(%arg0: i32) -> (i32, i32) {
    %c0_i32 = arith.constant 0 : i32
    %c0_i32_0 = arith.constant 0 : i32
    %c0_i32_1 = arith.constant 0 : i32
    return %c0_i32, %c0_i32_0 : i32, i32
  }
  func.func @transform_6(%arg0: i32) -> (i32, i32) {
    %c0_i32 = arith.constant 0 : i32
    %c0_i32_0 = arith.constant 0 : i32
    %c0_i32_1 = arith.constant 0 : i32
    return %c0_i32, %c0_i32_0 : i32, i32
  }
  func.func @transform_7(%arg0: i32) -> (i32, i32) {
    %c0_i32 = arith.constant 0 : i32
    %c0_i32_0 = arith.constant 0 : i32
    %c0_i32_1 = arith.constant 0 : i32
    return %c0_i32, %c0_i32_0 : i32, i32
  }
  func.func @transform_8(%arg0: i32) -> (i32, i32) {
    %c0_i32 = arith.constant 0 : i32
    %c0_i32_0 = arith.constant 0 : i32
    %c0_i32_1 = arith.constant 0 : i32
    return %c0_i32, %c0_i32_0 : i32, i32
  }
  func.func @transform_9(%arg0: i32) -> (i32, i32) {
    %c0_i32 = arith.constant 0 : i32
    %c0_i32_0 = arith.constant 0 : i32
    return %c0_i32, %arg0 : i32, i32
  }
}

</mosaic_0001>

<bundles_post_ra>
// kernel: tpu_custom_call.1
= control target key start
LH: loop header
LB: loop body
LE: loop exit
PB: predicated region body
PF: predicated region fallthrough
CT: control target
= control target key end

     0   :  { %v1864_v3 = vmov 0.0|0.0   ;;  %v1865_v6 = vmov 0   ;;  %vm1866_vm0 = vmmov 0   ;;  %v1867_v7 = vmov 0.0   ;;  %s2704_s0 = inlined_call_operand.vmem [shape: f32[128,128], index: 0, kind: input, shape index: {}]   ;;  %s2705_s1 = inlined_call_operand.vmem [shape: f32[120,128], index: 1, kind: input, shape index: {}]   ;;  %s2706_s2 = inlined_call_operand.vmem [shape: f32[120,1], index: 2, kind: input, shape index: {}]   ;;  %s2707_s3 = inlined_call_operand.vmem [shape: f32[360,40], index: 3, kind: input, shape index: {}]   ;;  %s2708_s4 = inlined_call_operand.vmem [shape: f32[360,1], index: 4, kind: input, shape index: {}]   ;;  %s2709_s5 = inlined_call_operand.vmem [shape: f32[20,120], index: 5, kind: input, shape index: {}]   ;;  %s2710_s6 = inlined_call_operand.vmem [shape: f32[20,1], index: 6, kind: input, shape index: {}]   ;;  %s2711_s7 = inlined_call_operand.vmem [shape: f32[2,20], index: 7, kind: input, shape index: {}]   ;;  %s2712_s8 = inlined_call_operand.vmem [shape: f32[2,1], index: 8, kind: input, shape index: {}]   ;;  %s2713_s9 = inlined_call_operand.hbm [shape: f32[2,128], index: 9, kind: output, shape index: {}]  }
   0x1   :  { %v33_v0 = vld [vmem:[%s2704_s0] sm:$0xff]  ;;  %v34_v1 = vld [vmem:[%s2704_s0 + $0x8] sm:$0xff]  ;;  %v35_v2 = vld [vmem:[%s2704_s0 + $0x10] sm:$0xff]  ;;  %1773 = vmatprep.subr.bf16.mxu0 %v1864_v3  ;;  %1838 = vset.pattern.permute.xlu0 %v1865_v6 }
   0x2   :  { %v1774_v4 = vpack.c.bf16 %v34_v1, %v33_v0  ;;  %v36_v5 = vld [vmem:[%s2704_s0 + $0x18] sm:$0xff]  ;;  %1839 = vset.pattern.permute.xlu1 %v1865_v6  ;;  %1535 = vmatprep.mubr.msk.f32.mxu0 %vm1866_vm0, %v1867_v7  ;;  %v37_v9 = vld [vmem:[%s2704_s0 + $0x20] sm:$0xff]  ;;  %v38_v10 = vld [vmem:[%s2704_s0 + $0x28] sm:$0xff] }
   0x3   :  { %v1777_v8 = vpack.c.bf16 %v36_v5, %v35_v2  ;;  %1827 = vmatprep.subr.bf16.mxu1 %v1864_v3  ;;  %v64_v11 = vld [vmem:[%s2706_s2] sm:$0xff]  ;;  %v69_v12 = vld [vmem:[%s2706_s2 + $0x28] sm:$0xff]  ;;  %1620 = vmatprep.mubr.msk.f32.mxu1 %vm1866_vm0, %v1867_v7  ;;  %v70_v14 = vld [vmem:[%s2706_s2 + $0x30] sm:$0xff]  ;;  %v1780_v15 = vpack.c.bf16 %v38_v10, %v37_v9 }
   0x4   :  { %1775 = vmatpush3.bf16.msra.mxu0 %v1774_v4  ;;  %81 = vperm.xlu0 %1838, %v64_v11   ;;  %v65_v13 = vld [vmem:[%s2706_s2 + $0x8] sm:$0xff]  ;;  %v39_v16 = vld [vmem:[%s2704_s0 + $0x30] sm:$0xff]  ;;  %v40_v17 = vld [vmem:[%s2704_s0 + $0x38] sm:$0xff] }
   0x5   :  { %1776 = vmatprep.subr.bf16.mxu0 %v1864_v3  ;;  %106 = vperm.xlu1 %1839, %v69_v12   ;;  %v74_v18 = vld [vmem:[%s2706_s2 + $0x50] sm:$0xff]  ;;  %v75_v19 = vld [vmem:[%s2706_s2 + $0x58] sm:$0xff]  ;;  %v1783_v20 = vpack.c.bf16 %v40_v17, %v39_v16  ;;  %v41_v21 = vld [vmem:[%s2704_s0 + $0x40] sm:$0xff] }
   0x6   :  { %v42_v22 = vld [vmem:[%s2704_s0 + $0x48] sm:$0xff]  ;;  %v66_v23 = vld [vmem:[%s2706_s2 + $0x10] sm:$0xff]  ;;  %v67_v24 = vld [vmem:[%s2706_s2 + $0x18] sm:$0xff] }
   0x7   :  { %v1786_v25 = vpack.c.bf16 %v42_v22, %v41_v21  ;;  %v43_v26 = vld [vmem:[%s2704_s0 + $0x50] sm:$0xff]  ;;  %v44_v27 = vld [vmem:[%s2704_s0 + $0x58] sm:$0xff]  ;;  %v72_v29 = vld [vmem:[%s2706_s2 + $0x40] sm:$0xff] }
   0x8   :  { %1778 = vmatpush3.bf16.msra.mxu0 %v1777_v8  ;;  %86 = vperm.xlu0 %1838, %v65_v13   ;;  %v71_v28 = vld [vmem:[%s2706_s2 + $0x38] sm:$0xff]  ;;  %v1789_v30 = vpack.c.bf16 %v44_v27, %v43_v26  ;;  %v45_v31 = vld [vmem:[%s2704_s0 + $0x60] sm:$0xff]  ;;  %v46_v32 = vld [vmem:[%s2704_s0 + $0x68] sm:$0xff] }
   0x9   :  { %1779 = vmatprep.subr.bf16.mxu0 %v1864_v3  ;;  %111 = vperm.xlu1 %1839, %v70_v14   ;;  %v76_v33 = vld [vmem:[%s2706_s2 + $0x60] sm:$0xff]  ;;  %v77_v34 = vld [vmem:[%s2706_s2 + $0x68] sm:$0xff]  ;;  %v1792_v35 = vpack.c.bf16 %v46_v32, %v45_v31  ;;  %v47_v36 = vld [vmem:[%s2704_s0 + $0x70] sm:$0xff] }
   0xa   :  { %v48_v37 = vld [vmem:[%s2704_s0 + $0x78] sm:$0xff]  ;;  %v68_v38 = vld [vmem:[%s2706_s2 + $0x20] sm:$0xff]  ;;  %v73_v39 = vld [vmem:[%s2706_s2 + $0x48] sm:$0xff] }
   0xb   :  { %v1795_v40 = vpack.c.bf16 %v48_v37, %v47_v36  ;;  %v78_v41 = vld [vmem:[%s2706_s2 + $0x70] sm:$0xff]  ;;  %v364_v42 = vld [vmem:[%s2708_s4] sm:$0xff] }
   0xc   :  { %1781 = vmatpush3.bf16.msra.mxu0 %v1780_v15  ;;  %131 = vperm.xlu0 %1838, %v74_v18   ;;  %v49_v43 = vld [vmem:[%s2705_s1] sm:$0xff] }
   0xd   :  { %1782 = vmatprep.subr.bf16.mxu0 %v1864_v3  ;;  %136 = vperm.xlu1 %1839, %v75_v19  }
  0x10   :  { %1784 = vmatpush3.bf16.msra.mxu0 %v1783_v20  ;;  %91 = vperm.xlu0 %1838, %v66_v23  }
  0x11   :  { %1785 = vmatprep.subr.bf16.mxu0 %v1864_v3  ;;  %96 = vperm.xlu1 %1839, %v67_v24  }
  0x14   :  { %1787 = vmatpush3.bf16.msra.mxu0 %v1786_v25  ;;  %116 = vperm.xlu0 %1838, %v71_v28  }
  0x15   :  { %1788 = vmatprep.subr.bf16.mxu0 %v1864_v3  ;;  %121 = vperm.xlu1 %1839, %v72_v29  }
  0x18   :  { %1790 = vmatpush3.bf16.msra.mxu0 %v1789_v30  ;;  %141 = vperm.xlu0 %1838, %v76_v33  }
  0x19   :  { %1791 = vmatprep.subr.bf16.mxu0 %v1864_v3  ;;  %146 = vperm.xlu1 %1839, %v77_v34  }
  0x1c   :  { %1793 = vmatpush3.bf16.msra.mxu0 %v1792_v35  ;;  %101 = vperm.xlu0 %1838, %v68_v38  }
  0x1d   :  { %1794 = vmatprep.subr.bf16.mxu0 %v1864_v3  ;;  %126 = vperm.xlu1 %1839, %v73_v39  }
  0x20   :  { %1796 = vmatpush3.bf16.msra.mxu0 %v1795_v40 }
  0x21   :  { %14 = vsyncpa [#allocation3], 0  ;;  %1797 = vmatprep.subr.bf16.mxu0 %v1864_v3  ;;  %151 = vperm.xlu0 %1838, %v78_v41   ;;  %v365_v44 = vld [vmem:[%s2708_s4 + $0x8] sm:$0xff]  ;;  %v379_v45 = vld [vmem:[%s2708_s4 + $0x78] sm:$0xff]  ;;  %vm634_vm1 = vcmask 326656   ;;  %vm1156_vm2 = vcmask 982016  }
  0x22   :  { %411 = vperm.xlu1 %1839, %v364_v42   ;;  %v50_v46 = vld [vmem:[%s2705_s1 + $0x8] sm:$0xff]  ;;  %v380_v47 = vld [vmem:[%s2708_s4 + $0x80] sm:$0xff]  ;;  %v394_v48 = vld [vmem:[%s2708_s4 + $0xf0] sm:$0xff]  ;;  %vm1260_vm3 = vcmask 1043456   ;;  %vm1256_vm4 = vcmask 162816   ;;  %s1868_s0 = smov [#allocation2]  }
  0x23   :  { %1536 = vmatmul.mubr.f32.vlgmr.msra.gmra.mrb[0].mxu0 %v49_v43  ;;  %v51_v49 = vld [vmem:[%s2705_s1 + $0x10] sm:$0xff]  ;;  %v395_v50 = vld [vmem:[%s2708_s4 + $0xf8] sm:$0xff]  ;;  %v381_v54 = vld [vmem:[%s2708_s4 + $0x88] sm:$0xff]  ;;  %s1342_s29 = sshll.u32 %s1868_s0, 4  ;;  %s1343_s29 = int_to_ptr.vmem [resolvable:$true] %s1342_s29 }
  0x24   :  { %1538 = vmatprep.mubr.msk.f32.mxu0 %vm1866_vm0, %v1867_v7  ;;  %v366_v51 = vld [vmem:[%s2708_s4 + $0x10] sm:$0xff]  ;;  %v52_v52 = vld [vmem:[%s2705_s1 + $0x18] sm:$0xff]  ;;  %v53_v55 = vld [vmem:[%s2705_s1 + $0x20] sm:$0xff]  ;;  %p1845_p1 = scmp.lt.s32.totalorder %s1343_s29, %s1343_s29 }
  0x25   :  { %416 = vperm.xlu0 %1838, %v365_v44   ;;  %v367_v53 = vld [vmem:[%s2708_s4 + $0x18] sm:$0xff]  ;;  %v382_v56 = vld [vmem:[%s2708_s4 + $0x90] sm:$0xff]  ;;  %v396_v57 = vld [vmem:[%s2708_s4 + $0x100] sm:$0xff] }
  0x26   :  { %486 = vperm.xlu1 %1839, %v379_v45   ;;  %v54_v58 = vld [vmem:[%s2705_s1 + $0x28] sm:$0xff]  ;;  %v368_v60 = vld [vmem:[%s2708_s4 + $0x20] sm:$0xff]  ;;  %v55_v61 = vld [vmem:[%s2705_s1 + $0x30] sm:$0xff] }
  0x27   :  { %1539 = vmatmul.mubr.f32.gmra.mrb[2].mxu0 %v50_v46  ;;  %v397_v59 = vld [vmem:[%s2708_s4 + $0x108] sm:$0xff]  ;;  %v383_v63 = vld [vmem:[%s2708_s4 + $0x98] sm:$0xff]  ;;  %v384_v1 = vld [vmem:[%s2708_s4 + $0xa0] sm:$0xff] }
  0x28   :  { %1541 = vmatprep.mubr.msk.f32.mxu0 %vm1866_vm0, %v1867_v7  ;;  %v369_v62 = vld [vmem:[%s2708_s4 + $0x28] sm:$0xff]  ;;  %v56_v0 = vld [vmem:[%s2705_s1 + $0x38] sm:$0xff]  ;;  %v398_v2 = vld [vmem:[%s2708_s4 + $0x110] sm:$0xff] }
  0x29   :  { %491 = vperm.xlu0 %1838, %v380_v47   ;;  %v57_v4 = vld [vmem:[%s2705_s1 + $0x40] sm:$0xff]  ;;  %v399_v5 = vld [vmem:[%s2708_s4 + $0x118] sm:$0xff]  ;;  %v370_v6 = vld [vmem:[%s2708_s4 + $0x30] sm:$0xff] }
  0x2a   :  { %561 = vperm.xlu1 %1839, %v394_v48   ;;  %v58_v8 = vld [vmem:[%s2705_s1 + $0x48] sm:$0xff]  ;;  %v371_v9 = vld [vmem:[%s2708_s4 + $0x38] sm:$0xff]  ;;  %v59_v11 = vld [vmem:[%s2705_s1 + $0x50] sm:$0xff] }
  0x2b   :  { %1542 = vmatmul.mubr.f32.gmra.mrb[4].mxu0 %v51_v49  ;;  %v385_v10 = vld [vmem:[%s2708_s4 + $0xa8] sm:$0xff]  ;;  %v386_v12 = vld [vmem:[%s2708_s4 + $0xb0] sm:$0xff]  ;;  %v400_v13 = vld [vmem:[%s2708_s4 + $0x120] sm:$0xff] }
  0x2c   :  { %1544 = vmatprep.mubr.msk.f32.mxu0 %vm1866_vm0, %v1867_v7  ;;  %v60_v14 = vld [vmem:[%s2705_s1 + $0x58] sm:$0xff]  ;;  %v401_v15 = vld [vmem:[%s2708_s4 + $0x128] sm:$0xff]  ;;  %v372_v16 = vld [vmem:[%s2708_s4 + $0x40] sm:$0xff] }
  0x2d   :  { %566 = vperm.xlu0 %1838, %v395_v50   ;;  %v61_v17 = vld [vmem:[%s2705_s1 + $0x60] sm:$0xff]  ;;  %v373_v18 = vld [vmem:[%s2708_s4 + $0x48] sm:$0xff]  ;;  %v387_v19 = vld [vmem:[%s2708_s4 + $0xb8] sm:$0xff] }
  0x2e   :  { %421 = vperm.xlu1 %1839, %v366_v51   ;;  %v62_v20 = vld [vmem:[%s2705_s1 + $0x68] sm:$0xff]  ;;  %v388_v21 = vld [vmem:[%s2708_s4 + $0xc0] sm:$0xff]  ;;  %v402_v22 = vld [vmem:[%s2708_s4 + $0x130] sm:$0xff] }
  0x2f   :  { %1545 = vmatmul.mubr.f32.gmra.mrb[6].mxu0 %v52_v52  ;;  %v63_v23 = vld [vmem:[%s2705_s1 + $0x70] sm:$0xff]  ;;  %v403_v24 = vld [vmem:[%s2708_s4 + $0x138] sm:$0xff]  ;;  %v389_v27 = vld [vmem:[%s2708_s4 + $0xc8] sm:$0xff]  ;;  %s1840_s1 = scalar_lea.vmem %s1343_s29, 32 }
  0x30   :  { %1547 = vmatprep.mubr.msk.f32.mxu0 %vm1866_vm0, %v1867_v7  ;;  %v374_v25 = vld [vmem:[%s2708_s4 + $0x50] sm:$0xff]  ;;  %v375_v26 = vld [vmem:[%s2708_s4 + $0x58] sm:$0xff]  ;;  %v404_v29 = vld [vmem:[%s2708_s4 + $0x140] sm:$0xff]  ;;  %p1841_p0 = scmp.ne.s32.totalorder %s1343_s29, %s1840_s1  ;;  %p1846_p2 = scmp.lt.s32.totalorder %s1840_s1, %s1840_s1 }
  0x31   :  { %426 = vperm.xlu0 %1838, %v367_v53   ;;  %v390_v28 = vld [vmem:[%s2708_s4 + $0xd0] sm:$0xff]  ;;  %v405_v30 = vld [vmem:[%s2708_s4 + $0x148] sm:$0xff]  ;;  %v376_v31 = vld [vmem:[%s2708_s4 + $0x60] sm:$0xff] }
  0x32   :  { %496 = vperm.xlu1 %1839, %v381_v54   ;;  %v377_v32 = vld [vmem:[%s2708_s4 + $0x68] sm:$0xff]  ;;  %v391_v33 = vld [vmem:[%s2708_s4 + $0xd8] sm:$0xff]  ;;  %v392_v34 = vld [vmem:[%s2708_s4 + $0xe0] sm:$0xff]  ;;  %p1847_p3 = por %p1846_p2, %p1845_p1 }
  0x33   :  { %1548 = vmatmul.mubr.f32.gmra.mrb[8].mxu0 %v53_v55  ;;  %v406_v35 = vld [vmem:[%s2708_s4 + $0x150] sm:$0xff]  ;;  %v407_v36 = vld [vmem:[%s2708_s4 + $0x158] sm:$0xff]  ;;  %v393_v38 = vld [vmem:[%s2708_s4 + $0xe8] sm:$0xff] }
  0x34   :  { %1550 = vmatprep.mubr.msk.f32.mxu0 %vm1866_vm0, %v1867_v7  ;;  %v378_v37 = vld [vmem:[%s2708_s4 + $0x70] sm:$0xff]  ;;  %v408_v39 = vld [vmem:[%s2708_s4 + $0x160] sm:$0xff]  ;;  %v1139_v41 = vld [vmem:[%s2710_s6 + $0x8] sm:$0xff]  ;;  %p1848_p4 = pnand %p1847_p3, %p1841_p0 }
  0x35   :  { %501 = vperm.xlu0 %1838, %v382_v56   ;;  %v1138_v40 = vld [vmem:[%s2710_s6] sm:$0xff]  ;;  %v1140_v42 = vld [vmem:[%s2710_s6 + $0x10] sm:$0xf] }
  0x36   :  { %571 = vperm.xlu1 %1839, %v396_v57   ;;  %v1250_v43 = vld [vmem:[%s2712_s8] sm:$0x3] }
  0x37   :  { %1551 = vmatmul.mubr.f32.gmra.mrb[10].mxu0 %v54_v58 }
  0x38   :  { %1553 = vmatprep.mubr.msk.f32.mxu0 %vm1866_vm0, %v1867_v7 }
  0x39   :  { %576 = vperm.xlu0 %1838, %v397_v59  }
  0x3a   :  { %431 = vperm.xlu1 %1839, %v368_v60  }
  0x3b   :  { %1554 = vmatmul.mubr.f32.gmra.mrb[12].mxu0 %v55_v61 }
  0x3c   :  { %1556 = vmatprep.mubr.msk.f32.mxu0 %vm1866_vm0, %v1867_v7 }
  0x3d   :  { %436 = vperm.xlu0 %1838, %v369_v62  }
  0x3e   :  { %506 = vperm.xlu1 %1839, %v383_v63  }
  0x3f   :  { %1557 = vmatmul.mubr.f32.gmra.mrb[14].mxu0 %v56_v0 }
  0x40   :  { %1559 = vmatprep.mubr.msk.f32.mxu0 %vm1866_vm0, %v1867_v7 }
  0x41   :  { %511 = vperm.xlu0 %1838, %v384_v1  }
  0x42   :  { %581 = vperm.xlu1 %1839, %v398_v2  }
  0x43   :  { %1560 = vmatmul.mubr.f32.gmra.mrb[16].mxu0 %v57_v4 }
  0x44   :  { %1562 = vmatprep.mubr.msk.f32.mxu0 %vm1866_vm0, %v1867_v7 }
  0x45   :  { %586 = vperm.xlu0 %1838, %v399_v5  }
  0x46   :  { %441 = vperm.xlu1 %1839, %v370_v6  }
  0x47   :  { %1563 = vmatmul.mubr.f32.gmra.mrb[18].mxu0 %v58_v8 }
  0x48   :  { %1565 = vmatprep.mubr.msk.f32.mxu0 %vm1866_vm0, %v1867_v7 }
  0x49   :  { %446 = vperm.xlu0 %1838, %v371_v9  }
  0x4a   :  { %516 = vperm.xlu1 %1839, %v385_v10  }
  0x4b   :  { %1566 = vmatmul.mubr.f32.gmra.mrb[20].mxu0 %v59_v11 }
  0x4c   :  { %1568 = vmatprep.mubr.msk.f32.mxu0 %vm1866_vm0, %v1867_v7 }
  0x4d   :  { %521 = vperm.xlu0 %1838, %v386_v12  }
  0x4e   :  { %591 = vperm.xlu1 %1839, %v400_v13  }
  0x4f   :  { %1569 = vmatmul.mubr.f32.gmra.mrb[22].mxu0 %v60_v14 }
  0x50   :  { %1571 = vmatprep.mubr.msk.f32.mxu0 %vm1866_vm0, %v1867_v7 }
  0x51   :  { %596 = vperm.xlu0 %1838, %v401_v15  }
  0x52   :  { %451 = vperm.xlu1 %1839, %v372_v16  }
  0x53   :  { %1572 = vmatmul.mubr.f32.gmra.mrb[24].mxu0 %v61_v17 }
  0x54   :  { %1574 = vmatprep.mubr.msk.f32.mxu0 %vm1866_vm0, %v1867_v7 }
  0x55   :  { %456 = vperm.xlu0 %1838, %v373_v18  }
  0x56   :  { %526 = vperm.xlu1 %1839, %v387_v19  }
  0x57   :  { %1575 = vmatmul.mubr.f32.gmra.mrb[26].mxu0 %v62_v20 }
  0x58   :  { %1577 = vmatprep.mubr.msk.f32.mxu0 %vm1866_vm0, %v1867_v7 }
  0x59   :  { %531 = vperm.xlu0 %1838, %v388_v21  }
  0x5a   :  { %601 = vperm.xlu1 %1839, %v402_v22  }
  0x5b   :  { %1578 = vmatmul.mubr.f32.gmra.mrb[28].mxu0 %v63_v23 }
  0x5c   :  { %1590 = vmatprep.mubr.msk.f32.mxu0 %vm1866_vm0, %v1867_v7 }
  0x5d   :  { %606 = vperm.xlu0 %1838, %v403_v24  }
  0x5e   :  { %461 = vperm.xlu1 %1839, %v374_v25  }
  0x61   :  { %466 = vperm.xlu0 %1838, %v375_v26  }
  0x62   :  { %536 = vperm.xlu1 %1839, %v389_v27  }
  0x65   :  { %541 = vperm.xlu0 %1838, %v390_v28  }
  0x66   :  { %611 = vperm.xlu1 %1839, %v404_v29  }
  0x69   :  { %616 = vperm.xlu0 %1838, %v405_v30  }
  0x6a   :  { %471 = vperm.xlu1 %1839, %v376_v31  }
  0x6d   :  { %476 = vperm.xlu0 %1838, %v377_v32  }
  0x6e   :  { %546 = vperm.xlu1 %1839, %v391_v33  }
  0x71   :  { %551 = vperm.xlu0 %1838, %v392_v34  }
  0x72   :  { %621 = vperm.xlu1 %1839, %v406_v35  }
  0x75   :  { %626 = vperm.xlu0 %1838, %v407_v36  }
  0x76   :  { %481 = vperm.xlu1 %1839, %v378_v37  }
  0x79   :  { %556 = vperm.xlu0 %1838, %v393_v38  }
  0x7a   :  { %631 = vperm.xlu1 %1839, %v408_v39  }
  0x7d   :  { %1143 = vperm.xlu0 %1838, %v1138_v40  }
  0x7e   :  { %1148 = vperm.xlu1 %1839, %v1139_v41  }
  0x81   :  { %1153 = vperm.xlu0 %1838, %v1140_v42  }
  0x82   :  { %1253 = vperm.xlu1 %1839, %v1250_v43  }
  0x83   :  { %v82_v44 = vpop.permute.xlu0 %81 }
  0x84   :  { %v107_v45 = vpop.permute.xlu1 %106 }
  0x87   :  { %v87_v48 = vpop.permute.xlu0 %86 }
  0x88   :  { %v112_v51 = vpop.permute.xlu1 %111 }
  0x8b   :  { %v132_v54 = vpop.permute.xlu0 %131 }
  0x8c   :  { %v137_v55 = vpop.permute.xlu1 %136 }
  0x8f   :  { %v92_v58 = vpop.permute.xlu0 %91 }
  0x90   :  { %v97_v61 = vpop.permute.xlu1 %96 }
  0x93   :  { %v117_v2 = vpop.permute.xlu0 %116 }
  0x94   :  { %v122_v8 = vpop.permute.xlu1 %121 }
  0x97   :  { %v142_v16 = vpop.permute.xlu0 %141 }
  0x98   :  { %v147_v21 = vpop.permute.xlu1 %146 }
  0x9b   :  { %v102_v29 = vpop.permute.xlu0 %101 }
  0x9c   :  { %v127_v33 = vpop.permute.xlu1 %126 }
  0xf6   :  { %v220_v46 = vpop.f32.mrb[0].mxu0 }
  0xf7   :  { %v1537_v47 = vpop.f32.mrb[1].mxu0  ;;  %v221_v62 = vadd.f32 %v220_v46, %v82_v44 }
  0xf9   :  { %v294_v4 = vmax.f32 %v221_v62, 0.0 }
  0xfa   :  { %v225_v49 = vpop.f32.mrb[2].mxu0 }
  0xfb   :  { %v1540_v50 = vpop.f32.mrb[3].mxu0  ;;  %v226_v5 = vadd.f32 %v225_v49, %v87_v48 }
  0xfd   :  { %v295_v13 = vmax.f32 %v226_v5, 0.0 }
  0xfe   :  { %v230_v52 = vpop.f32.mrb[4].mxu0 }
  0xff   :  { %v1543_v53 = vpop.f32.mrb[5].mxu0  ;;  %v231_v14 = vadd.f32 %v230_v52, %v92_v58 }
 0x101   :  { %v296_v22 = vmax.f32 %v231_v14, 0.0  ;;  %v332_v14 = vld [vmem:[%s2707_s3 + $0x68] sm:$0xff] }
 0x102   :  { %v235_v56 = vpop.f32.mrb[6].mxu0 }
 0x103   :  { %v1546_v57 = vpop.f32.mrb[7].mxu0  ;;  %v236_v23 = vadd.f32 %v235_v56, %v97_v61 }
 0x105   :  { %v297_v30 = vmax.f32 %v236_v23, 0.0  ;;  %v327_v23 = vld [vmem:[%s2707_s3 + $0x40] sm:$0xff] }
 0x106   :  { %v240_v59 = vpop.f32.mrb[8].mxu0 }
 0x107   :  { %v1549_v60 = vpop.f32.mrb[9].mxu0  ;;  %v241_v31 = vadd.f32 %v240_v59, %v102_v29  ;;  %v341_v29 = vld [vmem:[%s2707_s3 + $0xb0] sm:$0xff] }
 0x109   :  { %v298_v38 = vmax.f32 %v241_v31, 0.0  ;;  %v343_v31 = vld [vmem:[%s2707_s3 + $0xc0] sm:$0xff] }
 0x10a   :  { %v245_v63 = vpop.f32.mrb[10].mxu0 }
 0x10b   :  { %v246_v0 = vadd.f32 %v245_v63, %v107_v45  ;;  %v1552_v1 = vpop.f32.mrb[11].mxu0 }
 0x10d   :  { %v299_v6 = vmax.f32 %v246_v0, 0.0 }
 0x10e   :  { %v250_v9 = vpop.f32.mrb[12].mxu0 }
 0x10f   :  { %v309_v10 = vmax.f32 %v294_v4, %v299_v6  ;;  %v251_v11 = vadd.f32 %v250_v9, %v112_v51  ;;  %v1555_v12 = vpop.f32.mrb[13].mxu0  ;;  %v319_v6 = vld [vmem:[%s2707_s3] sm:$0xff]  ;;  %v320_v9 = vld [vmem:[%s2707_s3 + $0x8] sm:$0xff] }
 0x110   :  { %v331_v12 = vld [vmem:[%s2707_s3 + $0x60] sm:$0xff] }
 0x111   :  { %v300_v15 = vmax.f32 %v251_v11, 0.0  ;;  %v321_v11 = vld [vmem:[%s2707_s3 + $0x10] sm:$0xff] }
 0x112   :  { %v255_v17 = vpop.f32.mrb[14].mxu0 }
 0x113   :  { %v310_v18 = vmax.f32 %v295_v13, %v300_v15  ;;  %v256_v19 = vadd.f32 %v255_v17, %v117_v2  ;;  %v1558_v20 = vpop.f32.mrb[15].mxu0  ;;  %v322_v13 = vld [vmem:[%s2707_s3 + $0x18] sm:$0xff]  ;;  %v323_v15 = vld [vmem:[%s2707_s3 + $0x20] sm:$0xff]  ;;  %v324_v17 = vld [vmem:[%s2707_s3 + $0x28] sm:$0xff] }
 0x114   :  { %v335_v20 = vld [vmem:[%s2707_s3 + $0x80] sm:$0xff] }
 0x115   :  { %v301_v24 = vmax.f32 %v256_v19, 0.0  ;;  %v325_v19 = vld [vmem:[%s2707_s3 + $0x30] sm:$0xff] }
 0x116   :  { %v260_v25 = vpop.f32.mrb[16].mxu0 }
 0x117   :  { %v311_v26 = vmax.f32 %v296_v22, %v301_v24  ;;  %v261_v27 = vadd.f32 %v260_v25, %v122_v8  ;;  %v1561_v28 = vpop.f32.mrb[17].mxu0  ;;  %v329_v8 = vld [vmem:[%s2707_s3 + $0x50] sm:$0xff]  ;;  %v336_v22 = vld [vmem:[%s2707_s3 + $0x88] sm:$0xff] }
 0x118   :  { %v337_v24 = vld [vmem:[%s2707_s3 + $0x90] sm:$0xff]  ;;  %v328_v25 = vld [vmem:[%s2707_s3 + $0x48] sm:$0xff] }
 0x119   :  { %v302_v32 = vmax.f32 %v261_v27, 0.0  ;;  %v339_v27 = vld [vmem:[%s2707_s3 + $0xa0] sm:$0xff]  ;;  %v340_v28 = vld [vmem:[%s2707_s3 + $0xa8] sm:$0xff] }
 0x11a   :  { %v265_v34 = vpop.f32.mrb[18].mxu0 }
 0x11b   :  { %v312_v35 = vmax.f32 %v297_v30, %v302_v32  ;;  %v266_v36 = vadd.f32 %v265_v34, %v127_v33  ;;  %v1564_v37 = vpop.f32.mrb[19].mxu0  ;;  %v342_v30 = vld [vmem:[%s2707_s3 + $0xb8] sm:$0xff]  ;;  %v344_v32 = vld [vmem:[%s2707_s3 + $0xc8] sm:$0xff]  ;;  %v345_v33 = vld [vmem:[%s2707_s3 + $0xd0] sm:$0xff] }
 0x11c   :  { %v346_v34 = vld [vmem:[%s2707_s3 + $0xd8] sm:$0xff]  ;;  %v349_v37 = vld [vmem:[%s2707_s3 + $0xf0] sm:$0xff] }
 0x11d   :  { %v303_v39 = vmax.f32 %v266_v36, 0.0  ;;  %v348_v36 = vld [vmem:[%s2707_s3 + $0xe8] sm:$0xff] }
 0x11e   :  { %v270_v40 = vpop.f32.mrb[20].mxu0 }
 0x11f   :  { %v313_v41 = vmax.f32 %v298_v38, %v303_v39  ;;  %v271_v42 = vadd.f32 %v270_v40, %v132_v54  ;;  %v1567_v43 = vpop.f32.mrb[21].mxu0  ;;  %v350_v38 = vld [vmem:[%s2707_s3 + $0xf8] sm:$0xff]  ;;  %v351_v39 = vld [vmem:[%s2707_s3 + $0x100] sm:$0xff]  ;;  %v352_v40 = vld [vmem:[%s2707_s3 + $0x108] sm:$0xff] }
 0x120   :  { %v355_v43 = vld [vmem:[%s2707_s3 + $0x120] sm:$0xff] }
 0x121   :  { %v304_v44 = vmax.f32 %v271_v42, 0.0  ;;  %v354_v42 = vld [vmem:[%s2707_s3 + $0x118] sm:$0xff] }
 0x122   :  { %v275_v45 = vpop.f32.mrb[22].mxu0 }
 0x123   :  { %v314_v46 = vmax.f32 %v309_v10, %v304_v44  ;;  %v276_v47 = vadd.f32 %v275_v45, %v137_v55  ;;  %v1570_v48 = vpop.f32.mrb[23].mxu0  ;;  %v152_v55 = vpop.permute.xlu0 %151  ;;  %v330_v10 = vld [vmem:[%s2707_s3 + $0x58] sm:$0xff]  ;;  %v356_v44 = vld [vmem:[%s2707_s3 + $0x128] sm:$0xff]  ;;  %v357_v45 = vld [vmem:[%s2707_s3 + $0x130] sm:$0xff] }
 0x124   :  { %v360_v48 = vld [vmem:[%s2707_s3 + $0x148] sm:$0xff] }
 0x125   :  { %v305_v49 = vmax.f32 %v276_v47, 0.0  ;;  %v359_v47 = vld [vmem:[%s2707_s3 + $0x140] sm:$0xff] }
 0x126   :  { %v280_v50 = vpop.f32.mrb[24].mxu0 }
 0x127   :  { %v315_v51 = vmax.f32 %v310_v18, %v305_v49  ;;  %v281_v52 = vadd.f32 %v280_v50, %v142_v16  ;;  %v1573_v53 = vpop.f32.mrb[25].mxu0  ;;  %v333_v16 = vld [vmem:[%s2707_s3 + $0x70] sm:$0xff]  ;;  %v334_v18 = vld [vmem:[%s2707_s3 + $0x78] sm:$0xff] }
 0x128   :  { %v361_v49 = vld [vmem:[%s2707_s3 + $0x150] sm:$0xff]  ;;  %v362_v50 = vld [vmem:[%s2707_s3 + $0x158] sm:$0xff]  ;;  %v417_v53 = vpop.permute.xlu0 %416 }
 0x129   :  { %v1798_v56 = vpack.c.bf16 %v315_v51, %v314_v46  ;;  %v306_v57 = vmax.f32 %v281_v52, 0.0  ;;  %v358_v46 = vld [vmem:[%s2707_s3 + $0x138] sm:$0xff]  ;;  %v363_v51 = vld [vmem:[%s2707_s3 + $0x160] sm:$0xff]  ;;  %v412_v52 = vpop.permute.xlu1 %411 }
 0x12a   :  { %v285_v58 = vpop.f32.mrb[26].mxu0 }
 0x12b   :  { %v316_v59 = vmax.f32 %v311_v26, %v306_v57  ;;  %v286_v60 = vadd.f32 %v285_v58, %v147_v21  ;;  %v1576_v61 = vpop.f32.mrb[27].mxu0  ;;  %1799 = vmatpush3.bf16.msra.mxu0 %v1798_v56  ;;  %1830 = vmatpush3.bf16.msra.mxu1 %v1798_v56  ;;  %v326_v21 = vld [vmem:[%s2707_s3 + $0x38] sm:$0xff] }
 0x12c   :  { %1800 = vmatprep.subr.bf16.mxu0 %v1864_v3  ;;  %1828 = vmatprep.subr.bf16.mxu1 %v1864_v3  ;;  %v338_v26 = vld [vmem:[%s2707_s3 + $0x98] sm:$0xff]  ;;  %v492_v57 = vpop.permute.xlu0 %491 }
 0x12d   :  { %v307_v54 = vmax.f32 %v286_v60, 0.0  ;;  %v487_v56 = vpop.permute.xlu1 %486 }
 0x12e   :  { %v290_v62 = vpop.f32.mrb[28].mxu0 }
 0x12f   :  { %v317_v63 = vmax.f32 %v312_v35, %v307_v54  ;;  %v291_v0 = vadd.f32 %v290_v62, %v152_v55  ;;  %v1579_v1 = vpop.f32.mrb[29].mxu0  ;;  %v347_v35 = vld [vmem:[%s2707_s3 + $0xe0] sm:$0xff] }
 0x131   :  { %v1801_v2 = vpack.c.bf16 %v317_v63, %v316_v59  ;;  %v308_v4 = vmax.f32 %v291_v0, 0.0  ;;  %v2521_v58 = vpop.permute.xlu1 %561  ;;  %v2523_v59 = vpop.permute.xlu0 %566 }
 0x133   :  { %v318_v5 = vmax.f32 %v313_v41, %v308_v4  ;;  %1802 = vmatpush3.bf16.msra.mxu0 %v1801_v2  ;;  %1831 = vmatpush3.bf16.msra.mxu1 %v1801_v2  ;;  %v353_v41 = vld [vmem:[%s2707_s3 + $0x110] sm:$0xff] }
 0x134   :  { %1588 = vmatprep.subr.mxu0 %v1867_v7  ;;  %1829 = vmatprep.subr.mxu1 %v1867_v7 }
 0x135   :  { %v422_v60 = vpop.permute.xlu1 %421  ;;  %v2525_v61 = vpop.permute.xlu0 %426 }
 0x137   :  { %1589 = vmatpush3.msra.mxu0 %v318_v5  ;;  %1832 = vmatpush3.msra.mxu1 %v318_v5 }
 0x138   :  { %1591 = vmatmul.mubr.msk.f32.vlgmr.msra.gmra.mrb[30].mxu0 %vm634_vm1, %v319_v6  ;;  %1621 = vmatmul.mubr.msk.f32.vlgmr.msra.gmra.mrb[0].mxu1 %vm634_vm1, %v329_v8 }
 0x139   :  { %1593 = vmatprep.mubr.msk.f32.mxu0 %vm1866_vm0, %v1867_v7  ;;  %1623 = vmatprep.mubr.msk.f32.mxu1 %vm1866_vm0, %v1867_v7  ;;  %v497_v54 = vpop.permute.xlu1 %496  ;;  %v2527_v55 = vpop.permute.xlu0 %501 }
 0x13a   :  { %1803 = vmatprep.subr.bf16.mxu0 %v1864_v3 }
 0x13c   :  { %1594 = vmatmul.mubr.msk.f32.gmra.mrb[32].mxu0 %vm634_vm1, %v320_v9  ;;  %1624 = vmatmul.mubr.msk.f32.gmra.mrb[2].mxu1 %vm634_vm1, %v330_v10 }
 0x13d   :  { %1596 = vmatprep.mubr.msk.f32.mxu0 %vm1866_vm0, %v1867_v7  ;;  %1626 = vmatprep.mubr.msk.f32.mxu1 %vm1866_vm0, %v1867_v7  ;;  %v2529_v62 = vpop.permute.xlu1 %571  ;;  %v2531_v63 = vpop.permute.xlu0 %576 }
 0x140   :  { %1597 = vmatmul.mubr.msk.f32.gmra.mrb[34].mxu0 %vm634_vm1, %v321_v11  ;;  %1627 = vmatmul.mubr.msk.f32.gmra.mrb[4].mxu1 %vm634_vm1, %v331_v12 }
 0x141   :  { %1599 = vmatprep.mubr.msk.f32.mxu0 %vm1866_vm0, %v1867_v7  ;;  %1629 = vmatprep.mubr.msk.f32.mxu1 %vm1866_vm0, %v1867_v7  ;;  %v2533_v0 = vpop.permute.xlu1 %431  ;;  %v2535_v1 = vpop.permute.xlu0 %436 }
 0x144   :  { %1600 = vmatmul.mubr.msk.f32.gmra.mrb[36].mxu0 %vm634_vm1, %v322_v13  ;;  %1630 = vmatmul.mubr.msk.f32.gmra.mrb[6].mxu1 %vm634_vm1, %v332_v14 }
 0x145   :  { %1602 = vmatprep.mubr.msk.f32.mxu0 %vm1866_vm0, %v1867_v7  ;;  %1632 = vmatprep.mubr.msk.f32.mxu1 %vm1866_vm0, %v1867_v7  ;;  %v2537_v2 = vpop.permute.xlu1 %506  ;;  %v2539_v4 = vpop.permute.xlu0 %511 }
 0x148   :  { %1603 = vmatmul.mubr.msk.f32.gmra.mrb[38].mxu0 %vm634_vm1, %v323_v15  ;;  %1633 = vmatmul.mubr.msk.f32.gmra.mrb[8].mxu1 %vm634_vm1, %v333_v16 }
 0x149   :  { %1605 = vmatprep.mubr.msk.f32.mxu0 %vm1866_vm0, %v1867_v7  ;;  %1635 = vmatprep.mubr.msk.f32.mxu1 %vm1866_vm0, %v1867_v7  ;;  %v2541_v5 = vpop.permute.xlu1 %581  ;;  %v2543_v6 = vpop.permute.xlu0 %586 }
 0x14c   :  { %1606 = vmatmul.mubr.msk.f32.gmra.mrb[40].mxu0 %vm634_vm1, %v324_v17  ;;  %1636 = vmatmul.mubr.msk.f32.gmra.mrb[10].mxu1 %vm634_vm1, %v334_v18 }
 0x14d   :  { %1608 = vmatprep.mubr.msk.f32.mxu0 %vm1866_vm0, %v1867_v7  ;;  %1638 = vmatprep.mubr.msk.f32.mxu1 %vm1866_vm0, %v1867_v7  ;;  %v2545_v8 = vpop.permute.xlu1 %441  ;;  %v2547_v9 = vpop.permute.xlu0 %446 }
 0x150   :  { %1609 = vmatmul.mubr.msk.f32.gmra.mrb[42].mxu0 %vm634_vm1, %v325_v19  ;;  %1639 = vmatmul.mubr.msk.f32.gmra.mrb[12].mxu1 %vm634_vm1, %v335_v20 }
 0x151   :  { %1611 = vmatprep.mubr.msk.f32.mxu0 %vm1866_vm0, %v1867_v7  ;;  %1641 = vmatprep.mubr.msk.f32.mxu1 %vm1866_vm0, %v1867_v7  ;;  %v2549_v10 = vpop.permute.xlu1 %516  ;;  %v2553_v15 = vpop.permute.xlu0 %521 }
 0x154   :  { %1612 = vmatmul.mubr.msk.f32.gmra.mrb[44].mxu0 %vm634_vm1, %v326_v21  ;;  %1642 = vmatmul.mubr.msk.f32.gmra.mrb[14].mxu1 %vm634_vm1, %v336_v22 }
 0x155   :  { %1614 = vmatprep.mubr.msk.f32.mxu0 %vm1866_vm0, %v1867_v7  ;;  %1644 = vmatprep.mubr.msk.f32.mxu1 %vm1866_vm0, %v1867_v7  ;;  %v2557_v20 = vpop.permute.xlu1 %591 }
 0x158   :  { %1615 = vmatmul.mubr.msk.f32.gmra.mrb[46].mxu0 %vm634_vm1, %v327_v23  ;;  %1645 = vmatmul.mubr.msk.f32.gmra.mrb[16].mxu1 %vm634_vm1, %v337_v24 }
 0x159   :  { %1617 = vmatprep.mubr.msk.f32.mxu0 %vm1866_vm0, %v1867_v7  ;;  %1647 = vmatprep.mubr.msk.f32.mxu1 %vm1866_vm0, %v1867_v7 }
 0x15c   :  { %1618 = vmatmul.mubr.msk.f32.gmra.mrb[48].mxu0 %vm634_vm1, %v328_v25  ;;  %1648 = vmatmul.mubr.msk.f32.gmra.mrb[18].mxu1 %vm634_vm1, %v338_v26  ;;  %v2561_v25 = vpop.permute.xlu0 %596 }
 0x15d   :  { %1650 = vmatprep.mubr.msk.f32.mxu1 %vm1866_vm0, %v1867_v7  ;;  %1755 = vmatprep.mubr.msk.f32.mxu0 %vm1866_vm0, %v1867_v7 }
 0x160   :  { %1651 = vmatmul.mubr.msk.f32.gmra.mrb[20].mxu1 %vm634_vm1, %v339_v27 }
 0x161   :  { %1653 = vmatprep.mubr.msk.f32.mxu1 %vm1866_vm0, %v1867_v7 }
 0x164   :  { %1654 = vmatmul.mubr.msk.f32.gmra.mrb[22].mxu1 %vm634_vm1, %v340_v28 }
 0x165   :  { %1656 = vmatprep.mubr.msk.f32.mxu1 %vm1866_vm0, %v1867_v7 }
 0x168   :  { %1657 = vmatmul.mubr.msk.f32.gmra.mrb[24].mxu1 %vm634_vm1, %v341_v29 }
 0x169   :  { %1659 = vmatprep.mubr.msk.f32.mxu1 %vm1866_vm0, %v1867_v7 }
 0x16c   :  { %1660 = vmatmul.mubr.msk.f32.gmra.mrb[26].mxu1 %vm634_vm1, %v342_v30  ;;  %v2565_v30 = vpop.permute.xlu1 %451 }
 0x16d   :  { %1662 = vmatprep.mubr.msk.f32.mxu1 %vm1866_vm0, %v1867_v7 }
 0x170   :  { %1663 = vmatmul.mubr.msk.f32.gmra.mrb[28].mxu1 %vm634_vm1, %v343_v31 }
 0x171   :  { %1665 = vmatprep.mubr.msk.f32.mxu1 %vm1866_vm0, %v1867_v7 }
 0x174   :  { %1666 = vmatmul.mubr.msk.f32.gmra.mrb[30].mxu1 %vm634_vm1, %v344_v32 }
 0x175   :  { %1668 = vmatprep.mubr.msk.f32.mxu1 %vm1866_vm0, %v1867_v7 }
 0x178   :  { %1669 = vmatmul.mubr.msk.f32.gmra.mrb[32].mxu1 %vm634_vm1, %v345_v33 }
 0x179   :  { %1671 = vmatprep.mubr.msk.f32.mxu1 %vm1866_vm0, %v1867_v7 }
 0x17c   :  { %1672 = vmatmul.mubr.msk.f32.gmra.mrb[34].mxu1 %vm634_vm1, %v346_v34 }
 0x17d   :  { %1674 = vmatprep.mubr.msk.f32.mxu1 %vm1866_vm0, %v1867_v7 }
 0x180   :  { %1675 = vmatmul.mubr.msk.f32.gmra.mrb[36].mxu1 %vm634_vm1, %v347_v35  ;;  %v2569_v35 = vpop.permute.xlu0 %456 }
 0x181   :  { %1677 = vmatprep.mubr.msk.f32.mxu1 %vm1866_vm0, %v1867_v7 }
 0x184   :  { %1678 = vmatmul.mubr.msk.f32.gmra.mrb[38].mxu1 %vm634_vm1, %v348_v36 }
 0x185   :  { %1680 = vmatprep.mubr.msk.f32.mxu1 %vm1866_vm0, %v1867_v7 }
 0x188   :  { %1681 = vmatmul.mubr.msk.f32.gmra.mrb[40].mxu1 %vm634_vm1, %v349_v37 }
 0x189   :  { %1683 = vmatprep.mubr.msk.f32.mxu1 %vm1866_vm0, %v1867_v7 }
 0x18c   :  { %1684 = vmatmul.mubr.msk.f32.gmra.mrb[42].mxu1 %vm634_vm1, %v350_v38 }
 0x18d   :  { %1686 = vmatprep.mubr.msk.f32.mxu1 %vm1866_vm0, %v1867_v7 }
 0x190   :  { %1687 = vmatmul.mubr.msk.f32.gmra.mrb[44].mxu1 %vm634_vm1, %v351_v39 }
 0x191   :  { %1689 = vmatprep.mubr.msk.f32.mxu1 %vm1866_vm0, %v1867_v7 }
 0x194   :  { %1690 = vmatmul.mubr.msk.f32.gmra.mrb[46].mxu1 %vm634_vm1, %v352_v40 }
 0x195   :  { %1692 = vmatprep.mubr.msk.f32.mxu1 %vm1866_vm0, %v1867_v7 }
 0x198   :  { %1693 = vmatmul.mubr.msk.f32.gmra.mrb[48].mxu1 %vm634_vm1, %v353_v41 }
 0x199   :  { %1695 = vmatprep.mubr.msk.f32.mxu1 %vm1866_vm0, %v1867_v7 }
 0x19c   :  { %1696 = vmatmul.mubr.msk.f32.gmra.mrb[50].mxu1 %vm634_vm1, %v354_v42  ;;  %v2571_v42 = vpop.permute.xlu1 %526 }
 0x19d   :  { %1698 = vmatprep.mubr.msk.f32.mxu1 %vm1866_vm0, %v1867_v7 }
 0x1a0   :  { %1699 = vmatmul.mubr.msk.f32.gmra.mrb[52].mxu1 %vm634_vm1, %v355_v43 }
 0x1a1   :  { %1701 = vmatprep.mubr.msk.f32.mxu1 %vm1866_vm0, %v1867_v7 }
 0x1a4   :  { %1702 = vmatmul.mubr.msk.f32.gmra.mrb[54].mxu1 %vm634_vm1, %v356_v44 }
 0x1a5   :  { %1704 = vmatprep.mubr.msk.f32.mxu1 %vm1866_vm0, %v1867_v7 }
 0x1a8   :  { %1705 = vmatmul.mubr.msk.f32.gmra.mrb[56].mxu1 %vm634_vm1, %v357_v45 }
 0x1a9   :  { %1707 = vmatprep.mubr.msk.f32.mxu1 %vm1866_vm0, %v1867_v7 }
 0x1ac   :  { %1708 = vmatmul.mubr.msk.f32.gmra.mrb[58].mxu1 %vm634_vm1, %v358_v46 }
 0x1ad   :  { %1710 = vmatprep.mubr.msk.f32.mxu1 %vm1866_vm0, %v1867_v7 }
 0x1b0   :  { %1711 = vmatmul.mubr.msk.f32.gmra.mrb[60].mxu1 %vm634_vm1, %v359_v47 }
 0x1b1   :  { %1713 = vmatprep.mubr.msk.f32.mxu1 %vm1866_vm0, %v1867_v7 }
 0x1b4   :  { %1714 = vmatmul.mubr.msk.f32.gmra.mrb[62].mxu1 %vm634_vm1, %v360_v48 }
 0x1b5   :  { %1716 = vmatprep.mubr.msk.f32.mxu1 %vm1866_vm0, %v1867_v7 }
 0x1b8   :  { %1717 = vmatmul.mubr.msk.f32.gmra.mrb[64].mxu1 %vm634_vm1, %v361_v49 }
 0x1b9   :  { %1719 = vmatprep.mubr.msk.f32.mxu1 %vm1866_vm0, %v1867_v7 }
 0x1bc   :  { %1720 = vmatmul.mubr.msk.f32.gmra.mrb[66].mxu1 %vm634_vm1, %v362_v50 }
 0x1bd   :  { %1722 = vmatprep.mubr.msk.f32.mxu1 %vm1866_vm0, %v1867_v7 }
 0x1c0   :  { %1723 = vmatmul.mubr.msk.f32.gmra.mrb[68].mxu1 %vm634_vm1, %v363_v51 }
 0x20b   :  { %v836_v11 = vpop.f32.mrb[30].mxu0  ;;  %v2551_v12 = vpop.f32.mrb[0].mxu1 }
 0x20c   :  { %v1622_v13 = vpop.f32.mrb[1].mxu1  ;;  %v1592_v14 = vpop.f32.mrb[31].mxu0  ;;  %v837_v36 = vadd.f32 %v836_v11, %v412_v52 }
 0x20d   :  { %v2575_v13 = vpop.permute.xlu0 %531 }
 0x20e   :  { %v1060_v43 = vmax.f32 %v837_v36, 0.0 }
 0x20f   :  { %v841_v16 = vpop.f32.mrb[32].mxu0  ;;  %v2555_v17 = vpop.f32.mrb[2].mxu1 }
 0x210   :  { %v1625_v18 = vpop.f32.mrb[3].mxu1  ;;  %v1595_v19 = vpop.f32.mrb[33].mxu0  ;;  %v842_v44 = vadd.f32 %v841_v16, %v417_v53 }
 0x211   :  { %v2579_v16 = vpop.permute.xlu1 %601 }
 0x212   :  { %v1061_v52 = vmax.f32 %v842_v44, 0.0 }
 0x213   :  { %v846_v21 = vpop.f32.mrb[34].mxu0  ;;  %v2559_v22 = vpop.f32.mrb[4].mxu1 }
 0x214   :  { %v1628_v23 = vpop.f32.mrb[5].mxu1  ;;  %v1598_v24 = vpop.f32.mrb[35].mxu0  ;;  %v847_v11 = vadd.f32 %v846_v21, %v422_v60 }
 0x217   :  { %v851_v26 = vpop.f32.mrb[36].mxu0  ;;  %v2563_v27 = vpop.f32.mrb[6].mxu1 }
 0x218   :  { %v1631_v28 = vpop.f32.mrb[7].mxu1  ;;  %v1601_v29 = vpop.f32.mrb[37].mxu0 }
 0x219   :  { %v1062_v28 = vmax.f32 %v847_v11, 0.0  ;;  %v852_v29 = vadd.f32 %v851_v26, %v2525_v61 }
 0x21b   :  { %v856_v31 = vpop.f32.mrb[38].mxu0  ;;  %v2567_v32 = vpop.f32.mrb[8].mxu1 }
 0x21c   :  { %v1634_v33 = vpop.f32.mrb[9].mxu1  ;;  %v1604_v34 = vpop.f32.mrb[39].mxu0 }
 0x21f   :  { %v861_v37 = vpop.f32.mrb[40].mxu0  ;;  %v911_v38 = vpop.f32.mrb[10].mxu1 }
 0x220   :  { %v912_v39 = vadd.f32 %v911_v38, %v487_v56  ;;  %v1637_v40 = vpop.f32.mrb[11].mxu1  ;;  %v1607_v41 = vpop.f32.mrb[41].mxu0 }
 0x221   :  { %v1063_v40 = vmax.f32 %v852_v29, 0.0 }
 0x222   :  { %v1075_v45 = vmax.f32 %v912_v39, 0.0  ;;  %v2585_v39 = vpop.permute.xlu0 %606 }
 0x223   :  { %v866_v46 = vpop.f32.mrb[42].mxu0  ;;  %v916_v47 = vpop.f32.mrb[12].mxu1 }
 0x224   :  { %v2573_v48 = vmax.f32 %v1060_v43, %v1075_v45  ;;  %v917_v49 = vadd.f32 %v916_v47, %v492_v57  ;;  %v1640_v50 = vpop.f32.mrb[13].mxu1  ;;  %v1610_v51 = vpop.f32.mrb[43].mxu0 }
 0x226   :  { %v1076_v14 = vmax.f32 %v917_v49, 0.0  ;;  %v462_v49 = vpop.permute.xlu1 %461 }
 0x227   :  { %v871_v56 = vpop.f32.mrb[44].mxu0  ;;  %v921_v18 = vpop.f32.mrb[14].mxu1 }
 0x228   :  { %v2577_v19 = vmax.f32 %v1061_v52, %v1076_v14  ;;  %v922_v23 = vadd.f32 %v921_v18, %v497_v54  ;;  %v1643_v24 = vpop.f32.mrb[15].mxu1  ;;  %v1613_v53 = vpop.f32.mrb[45].mxu0  ;;  %v857_v54 = vadd.f32 %v856_v31, %v2533_v0 }
 0x229   :  { %v467_v52 = vpop.permute.xlu0 %466 }
 0x22a   :  { %v1077_v57 = vmax.f32 %v922_v23, 0.0  ;;  %v1064_v50 = vmax.f32 %v857_v54, 0.0  ;;  %v867_v23 = vadd.f32 %v866_v46, %v2545_v8  ;;  %v537_v53 = vpop.permute.xlu1 %536 }
 0x22b   :  { %v876_v33 = vpop.f32.mrb[46].mxu0  ;;  %v926_v34 = vpop.f32.mrb[16].mxu1 }
 0x22c   :  { %v2582_v36 = vmax.f32 %v1062_v28, %v1077_v57  ;;  %v927_v60 = vadd.f32 %v926_v34, %v2527_v55  ;;  %v1646_v21 = vpop.f32.mrb[17].mxu1  ;;  %v1616_v38 = vpop.f32.mrb[47].mxu0  ;;  %v862_v55 = vadd.f32 %v861_v37, %v2535_v1  ;;  %v1066_v37 = vmax.f32 %v867_v23, 0.0 }
 0x22d   :  { %v542_v1 = vpop.permute.xlu0 %541  ;;  %v872_v34 = vadd.f32 %v871_v56, %v2547_v9  ;;  %v877_v54 = vadd.f32 %v876_v33, %v2565_v30 }
 0x22e   :  { %v1078_v41 = vmax.f32 %v927_v60, 0.0  ;;  %v1065_v18 = vmax.f32 %v862_v55, 0.0  ;;  %v2603_v8 = vpop.permute.xlu1 %611 }
 0x22f   :  { %v881_v43 = vpop.f32.mrb[48].mxu0  ;;  %v931_v44 = vpop.f32.mrb[18].mxu1  ;;  %v1067_v46 = vmax.f32 %v872_v34, 0.0 }
 0x230   :  { %v2588_v45 = vmax.f32 %v1063_v40, %v1078_v41  ;;  %v932_v61 = vadd.f32 %v931_v44, %v2537_v2  ;;  %v1649_v26 = vpop.f32.mrb[19].mxu1  ;;  %v1619_v47 = vpop.f32.mrb[49].mxu0 }
 0x231   :  { %v2606_v44 = vpop.permute.xlu0 %616  ;;  %v1068_v26 = vmax.f32 %v877_v54, 0.0  ;;  %v882_v47 = vadd.f32 %v881_v43, %v2569_v35  ;;  %v892_v43 = vadd.f32 %v2555_v17, %v467_v52 }
 0x232   :  { %v1079_v51 = vmax.f32 %v932_v61, 0.0 }
 0x233   :  { %v936_v11 = vpop.f32.mrb[20].mxu1 }
 0x234   :  { %v2592_v14 = vmax.f32 %v1064_v50, %v1079_v51  ;;  %v937_v0 = vadd.f32 %v936_v11, %v2539_v4  ;;  %v1652_v31 = vpop.f32.mrb[21].mxu1 }
 0x235   :  { %v477_v33 = vpop.permute.xlu0 %476  ;;  %v1069_v31 = vmax.f32 %v882_v47, 0.0 }
 0x236   :  { %v1080_v24 = vmax.f32 %v937_v0, 0.0  ;;  %v887_v0 = vadd.f32 %v2551_v12, %v462_v49  ;;  %v902_v52 = vadd.f32 %v2563_v27, %v477_v33 }
 0x237   :  { %v941_v2 = vpop.f32.mrb[22].mxu1 }
 0x238   :  { %v2596_v28 = vmax.f32 %v1065_v18, %v1080_v24  ;;  %v942_v29 = vadd.f32 %v941_v2, %v2549_v10  ;;  %v1655_v57 = vpop.f32.mrb[23].mxu1  ;;  %v1070_v35 = vmax.f32 %v887_v0, 0.0 }
 0x23a   :  { %v1081_v60 = vmax.f32 %v942_v29, 0.0 }
 0x23b   :  { %v946_v21 = vpop.f32.mrb[24].mxu1 }
 0x23c   :  { %v2600_v38 = vmax.f32 %v1066_v37, %v1081_v60  ;;  %v947_v4 = vadd.f32 %v946_v21, %v2553_v15  ;;  %v1658_v40 = vpop.f32.mrb[25].mxu1  ;;  %v472_v15 = vpop.permute.xlu1 %471 }
 0x23d   :  { %v552_v37 = vpop.permute.xlu0 %551  ;;  %v897_v12 = vadd.f32 %v2559_v22, %v472_v15 }
 0x23e   :  { %v1082_v41 = vmax.f32 %v947_v4, 0.0  ;;  %v1071_v4 = vmax.f32 %v892_v43, 0.0 }
 0x23f   :  { %v951_v10 = vpop.f32.mrb[26].mxu1  ;;  %v1072_v17 = vmax.f32 %v897_v12, 0.0 }
 0x240   :  { %v2608_v61 = vmax.f32 %v1067_v46, %v1082_v41  ;;  %v952_v9 = vadd.f32 %v951_v10, %v2571_v42  ;;  %v1661_v56 = vpop.f32.mrb[27].mxu1  ;;  %v547_v29 = vpop.permute.xlu1 %546 }
 0x241   :  { %v2626_v10 = vpop.permute.xlu0 %626 }
 0x242   :  { %v1083_v50 = vmax.f32 %v952_v9, 0.0 }
 0x243   :  { %v956_v55 = vpop.f32.mrb[28].mxu1 }
 0x244   :  { %v2612_v51 = vmax.f32 %v1068_v26, %v1083_v50  ;;  %v957_v11 = vadd.f32 %v956_v55, %v2575_v13  ;;  %v1664_v30 = vpop.f32.mrb[29].mxu1  ;;  %v2622_v40 = vpop.permute.xlu1 %621  ;;  %v1073_v50 = vmax.f32 %v902_v52, 0.0 }
 0x246   :  { %v1084_v18 = vmax.f32 %v957_v11, 0.0  ;;  %v557_v11 = vpop.permute.xlu0 %556 }
 0x247   :  { %v961_v23 = vpop.f32.mrb[30].mxu1 }
 0x248   :  { %v2616_v24 = vmax.f32 %v1069_v31, %v1084_v18  ;;  %v962_v42 = vadd.f32 %v961_v23, %v537_v53  ;;  %v1667_v2 = vpop.f32.mrb[31].mxu1  ;;  %v482_v22 = vpop.permute.xlu1 %481 }
 0x249   :  { %v907_v15 = vadd.f32 %v2567_v32, %v482_v22 }
 0x24a   :  { %v1085_v57 = vmax.f32 %v962_v42, 0.0 }
 0x24b   :  { %v966_v34 = vpop.f32.mrb[32].mxu1  ;;  %v1074_v23 = vmax.f32 %v907_v15, 0.0 }
 0x24c   :  { %v2619_v60 = vmax.f32 %v1070_v35, %v1085_v57  ;;  %v967_v13 = vadd.f32 %v966_v34, %v542_v1  ;;  %v1670_v21 = vpop.f32.mrb[33].mxu1 }
 0x24e   :  { %v1086_v49 = vmax.f32 %v967_v13, 0.0 }
 0x24f   :  { %v971_v46 = vpop.f32.mrb[34].mxu1 }
 0x250   :  { %v2624_v53 = vmax.f32 %v1071_v4, %v1086_v49  ;;  %v972_v54 = vadd.f32 %v971_v46, %v547_v29  ;;  %v1673_v41 = vpop.f32.mrb[35].mxu1 }
 0x252   :  { %v1087_v9 = vmax.f32 %v972_v54, 0.0 }
 0x253   :  { %v976_v56 = vpop.f32.mrb[36].mxu1 }
 0x254   :  { %v2629_v1 = vmax.f32 %v1072_v17, %v1087_v9  ;;  %v977_v26 = vadd.f32 %v976_v56, %v552_v37  ;;  %v1676_v47 = vpop.f32.mrb[37].mxu1 }
 0x256   :  { %v1088_v55 = vmax.f32 %v977_v26, 0.0 }
 0x257   :  { %v981_v30 = vpop.f32.mrb[38].mxu1 }
 0x258   :  { %v2632_v0 = vmax.f32 %v1073_v50, %v1088_v55  ;;  %v982_v31 = vadd.f32 %v981_v30, %v557_v11  ;;  %v1679_v18 = vpop.f32.mrb[39].mxu1 }
 0x25a   :  { %v1089_v42 = vmax.f32 %v982_v31, 0.0 }
 0x25b   :  { %v986_v27 = vpop.f32.mrb[40].mxu1 }
 0x25c   :  { %v2634_v33 = vmax.f32 %v1074_v23, %v1089_v42  ;;  %v987_v2 = vadd.f32 %v986_v27, %v2521_v58  ;;  %v1682_v29 = vpop.f32.mrb[41].mxu1 }
 0x25e   :  { %v1090_v35 = vmax.f32 %v987_v2, 0.0 }
 0x25f   :  { %v991_v43 = vpop.f32.mrb[42].mxu1 }
 0x260   :  { %v1120_v57 = vmax.f32 %v2573_v48, %v1090_v35  ;;  %v992_v32 = vadd.f32 %v991_v43, %v2523_v59  ;;  %v1685_v37 = vpop.f32.mrb[43].mxu1 }
 0x262   :  { %v1091_v34 = vmax.f32 %v992_v32, 0.0 }
 0x263   :  { %v996_v13 = vpop.f32.mrb[44].mxu1 }
 0x264   :  { %v1121_v21 = vmax.f32 %v2577_v19, %v1091_v34  ;;  %v997_v4 = vadd.f32 %v996_v13, %v2529_v62  ;;  %v1688_v12 = vpop.f32.mrb[45].mxu1 }
 0x266   :  { %v1804_v49 = vpack.c.bf16 %v1121_v21, %v1120_v57  ;;  %v1092_v46 = vmax.f32 %v997_v4, 0.0 }
 0x267   :  { %v1001_v54 = vpop.f32.mrb[46].mxu1 }
 0x268   :  { %v1122_v58 = vmax.f32 %v2582_v36, %v1092_v46  ;;  %v1002_v41 = vadd.f32 %v1001_v54, %v2531_v63  ;;  %v1691_v17 = vpop.f32.mrb[47].mxu1  ;;  %1805 = vmatpush3.bf16.msra.mxu0 %v1804_v49 }
 0x269   :  { %1806 = vmatprep.subr.bf16.mxu0 %v1864_v3 }
 0x26a   :  { %v1093_v59 = vmax.f32 %v1002_v41, 0.0 }
 0x26b   :  { %v1006_v48 = vpop.f32.mrb[48].mxu1 }
 0x26c   :  { %v1123_v52 = vmax.f32 %v2588_v45, %v1093_v59  ;;  %v1007_v19 = vadd.f32 %v1006_v48, %v2541_v5  ;;  %v1694_v9 = vpop.f32.mrb[49].mxu1  ;;  %v632_v59 = vpop.permute.xlu1 %631 }
 0x26e   :  { %v1807_v62 = vpack.c.bf16 %v1123_v52, %v1122_v58  ;;  %v1094_v56 = vmax.f32 %v1007_v19, 0.0 }
 0x26f   :  { %v1011_v26 = vpop.f32.mrb[50].mxu1 }
 0x270   :  { %v1124_v47 = vmax.f32 %v2592_v14, %v1094_v56  ;;  %v1012_v36 = vadd.f32 %v1011_v26, %v2543_v6  ;;  %v1697_v22 = vpop.f32.mrb[51].mxu1  ;;  %1808 = vmatpush3.bf16.msra.mxu0 %v1807_v62  ;;  %v1144_v56 = vpop.permute.xlu0 %1143 }
 0x271   :  { %1809 = vmatprep.subr.bf16.mxu0 %v1864_v3 }
 0x272   :  { %v1095_v63 = vmax.f32 %v1012_v36, 0.0 }
 0x273   :  { %v1016_v50 = vpop.f32.mrb[52].mxu1 }
 0x274   :  { %v1125_v15 = vmax.f32 %v2596_v28, %v1095_v63  ;;  %v1017_v45 = vadd.f32 %v1016_v50, %v2557_v20  ;;  %v1700_v55 = vpop.f32.mrb[53].mxu1 }
 0x276   :  { %v1810_v5 = vpack.c.bf16 %v1125_v15, %v1124_v47  ;;  %v1096_v11 = vmax.f32 %v1017_v45, 0.0  ;;  %v1149_v47 = vpop.permute.xlu1 %1148  ;;  %v1154_v45 = vpop.permute.xlu0 %1153 }
 0x277   :  { %v1021_v30 = vpop.f32.mrb[54].mxu1 }
 0x278   :  { %v1126_v31 = vmax.f32 %v2600_v38, %v1096_v11  ;;  %v1022_v14 = vadd.f32 %v1021_v30, %v2561_v25  ;;  %v1703_v18 = vpop.f32.mrb[55].mxu1  ;;  %1811 = vmatpush3.bf16.msra.mxu0 %v1810_v5 }
 0x279   :  { %1812 = vmatprep.subr.bf16.mxu0 %v1864_v3 }
 0x27a   :  { %v1097_v6 = vmax.f32 %v1022_v14, 0.0  ;;  %v1249_v14 = vld [vmem:[%s2711_s7] sm:$0x3]  ;;  %v1254_v18 = vpop.permute.xlu1 %1253 }
 0x27b   :  { %v1026_v23 = vpop.f32.mrb[56].mxu1 }
 0x27c   :  { %v1127_v42 = vmax.f32 %v2608_v61, %v1097_v6  ;;  %v1027_v28 = vadd.f32 %v1026_v23, %v2579_v16  ;;  %v1706_v27 = vpop.f32.mrb[57].mxu1 }
 0x27e   :  { %v1813_v20 = vpack.c.bf16 %v1127_v42, %v1126_v31  ;;  %v1098_v2 = vmax.f32 %v1027_v28, 0.0 }
 0x27f   :  { %v1031_v29 = vpop.f32.mrb[58].mxu1 }
 0x280   :  { %v1128_v35 = vmax.f32 %v2612_v51, %v1098_v2  ;;  %v1032_v38 = vadd.f32 %v1031_v29, %v2585_v39  ;;  %v1709_v43 = vpop.f32.mrb[59].mxu1  ;;  %1814 = vmatpush3.bf16.msra.mxu0 %v1813_v20 }
 0x281   :  { %1815 = vmatprep.subr.bf16.mxu0 %v1864_v3 }
 0x282   :  { %v1099_v25 = vmax.f32 %v1032_v38, 0.0 }
 0x283   :  { %v1036_v57 = vpop.f32.mrb[60].mxu1 }
 0x284   :  { %v1129_v32 = vmax.f32 %v2616_v24, %v1099_v25  ;;  %v1037_v61 = vadd.f32 %v1036_v57, %v2603_v8  ;;  %v1712_v37 = vpop.f32.mrb[61].mxu1 }
 0x286   :  { %v1816_v16 = vpack.c.bf16 %v1129_v32, %v1128_v35  ;;  %v1100_v34 = vmax.f32 %v1037_v61, 0.0 }
 0x287   :  { %v1041_v13 = vpop.f32.mrb[62].mxu1 }
 0x288   :  { %v1130_v21 = vmax.f32 %v2619_v60, %v1100_v34  ;;  %v1042_v51 = vadd.f32 %v1041_v13, %v2606_v44  ;;  %v1715_v4 = vpop.f32.mrb[63].mxu1  ;;  %1817 = vmatpush3.bf16.msra.mxu0 %v1816_v16 }
 0x289   :  { %1818 = vmatprep.subr.bf16.mxu0 %v1864_v3 }
 0x28a   :  { %v1101_v39 = vmax.f32 %v1042_v51, 0.0 }
 0x28b   :  { %v1046_v12 = vpop.f32.mrb[64].mxu1 }
 0x28c   :  { %v1131_v49 = vmax.f32 %v2624_v53, %v1101_v39  ;;  %v1047_v24 = vadd.f32 %v1046_v12, %v2622_v40  ;;  %v1718_v46 = vpop.f32.mrb[65].mxu1 }
 0x28e   :  { %v1819_v8 = vpack.c.bf16 %v1131_v49, %v1130_v21  ;;  %v1102_v54 = vmax.f32 %v1047_v24, 0.0 }
 0x28f   :  { %v1051_v58 = vpop.f32.mrb[66].mxu1 }
 0x290   :  { %v1132_v41 = vmax.f32 %v2629_v1, %v1102_v54  ;;  %v1052_v60 = vadd.f32 %v1051_v58, %v2626_v10  ;;  %v1721_v17 = vpop.f32.mrb[67].mxu1  ;;  %1820 = vmatpush3.bf16.msra.mxu0 %v1819_v8  ;;  %v1135_v10 = vld [vmem:[%s2709_s5] sm:$0xff]  ;;  %v1136_v1 = vld [vmem:[%s2709_s5 + $0x8] sm:$0xff] }
 0x291   :  { %1821 = vmatprep.subr.bf16.mxu0 %v1864_v3 }
 0x292   :  { %v1103_v44 = vmax.f32 %v1052_v60, 0.0 }
 0x293   :  { %v1056_v48 = vpop.f32.mrb[68].mxu1 }
 0x294   :  { %v1133_v52 = vmax.f32 %v2632_v0, %v1103_v44  ;;  %v1057_v53 = vadd.f32 %v1056_v48, %v632_v59  ;;  %v1724_v19 = vpop.f32.mrb[69].mxu1  ;;  %v1137_v0 = vld [vmem:[%s2709_s5 + $0x10] sm:$0xf] }
 0x296   :  { %v1822_v40 = vpack.c.bf16 %v1133_v52, %v1132_v41  ;;  %v1104_v9 = vmax.f32 %v1057_v53, 0.0 }
 0x298   :  { %v1134_v62 = vmax.f32 %v2634_v33, %v1104_v9  ;;  %1823 = vmatpush3.bf16.msra.mxu0 %v1822_v40 }
 0x299   :  { %1753 = vmatprep.subr.mxu0 %v1867_v7 }
 0x29c   :  { %1754 = vmatpush3.msra.mxu0 %v1134_v62 }
 0x29d   :  { %1756 = vmatmul.mubr.msk.f32.vlgmr.msra.gmra.mrb[50].mxu0 %vm1156_vm2, %v1135_v10  ;;  %1824 = vmatprep.subr.bf16.mxu0 %v1864_v3 }
 0x29e   :  { %1758 = vmatprep.mubr.msk.f32.mxu0 %vm1866_vm0, %v1867_v7 }
 0x2a1   :  { %1759 = vmatmul.mubr.msk.f32.gmra.mrb[52].mxu0 %vm1156_vm2, %v1136_v1 }
 0x2a2   :  { %1761 = vmatprep.mubr.msk.f32.mxu0 %vm1866_vm0, %v1867_v7 }
 0x2a5   :  { %1762 = vmatmul.mubr.msk.f32.gmra.mrb[54].mxu0 %vm1156_vm2, %v1137_v0 }
 0x2a6   :  { %1770 = vmatprep.mubr.msk.f32.mxu0 %vm1866_vm0, %v1867_v7 }
 0x370   :  { %v1232_v3 = vpop.f32.mrb[50].mxu0 }
 0x371   :  { %v1757_v33 = vpop.f32.mrb[51].mxu0  ;;  %v1233_v26 = vadd.f32 %v1232_v3, %v1144_v56 }
 0x373   :  { %v1246_v50 = vmax.f32 %v1233_v26, 0.0 }
 0x374   :  { %v1237_v36 = vpop.f32.mrb[52].mxu0 }
 0x375   :  { %v1238_v22 = vadd.f32 %v1237_v36, %v1149_v47  ;;  %v1760_v63 = vpop.f32.mrb[53].mxu0 }
 0x377   :  { %v1247_v15 = vmax.f32 %v1238_v22, 0.0 }
 0x378   :  { %v1242_v55 = vpop.f32.mrb[54].mxu0 }
 0x379   :  { %v1825_v5 = vpack.c.bf16 %v1247_v15, %v1246_v50  ;;  %v1243_v11 = vadd.f32 %v1242_v55, %v1154_v45  ;;  %v1763_v30 = vpop.f32.mrb[55].mxu0 }
 0x37b   :  { %1826 = vmatpush3.bf16.msra.mxu0 %v1825_v5  ;;  %v1248_v31 = vmax.f32 %v1243_v11, 0.0 }
 0x37c   :  { %1768 = vmatprep.subr.mxu0 %v1867_v7 }
 0x37f   :  { %1769 = vmatpush3.msk.msra.mxu0 %vm1260_vm3, %v1248_v31 }
 0x380   :  { %1771 = vmatmul.mubr.msk.f32.vlgmr.msra.gmra.mrb[56].mxu0 %vm1256_vm4, %v1249_v14 }
 0x453   :  { %v1330_v6 = vpop.f32.mrb[56].mxu0 }
 0x454   :  { %v1331_v23 = vadd.f32 %v1330_v6, %v1254_v18  ;;  %v1772_v42 = vpop.f32.mrb[57].mxu0 }
 0x456   :  { %v1334_v28 = vmax.f32 %v1331_v23, 0.0 }
 0x458   :  { %1335 = vst [vmem:[#allocation2] sm:$0x3] %v1334_v28 }
 0x459   :  { %1851 = shalt.err (!%p1848_p4)
}
 0x45a   :  { %s1852_s10 = scalar_lea.hbm %s2713_s9, 32 }
 0x45b   :  { %p1853_p5 = scmp.ne.s32.totalorder %s2713_s9, %s1852_s10  ;;  %p1856_p6 = scmp.lt.u32.totalorder %s1852_s10, %s2713_s9 }
 0x45d   :  { %p1858_p7 = pnand %p1856_p6, %p1853_p5 }
 0x45f   :  { %1861 = shalt.err (!%p1858_p7)
}
 0x460   :  { %1345 = dma.vmem_to_hbm [thread:$0]  %s1343_s29, 32, %s2713_s9, [#allocation3]  }
 0x461   :  { %1862 = dma.done.wait [#allocation3], 32  }
 0x462   :  { %1863 = vsyncadd [#allocation3], 4294967264 }
 0x463   :  { %1349 = vsyncpa [#allocation3], 1 }

</bundles_post_ra>
